<compile_context>
chip_gen: v7x
topology: tpu7x:2x2x1
jax: 0.10.0
libtpu: 0.0.40
codegen_flags: <defaults>
</compile_context>

<pallas_src>
import functools

import jax
import jax.numpy as jnp
import numpy as np
from jax.experimental import pallas as pl
from jax.experimental.pallas import tpu as pltpu


def _conv_gemm_kernel(x_ref, wt_ref, b_ref, o_ref, *, kh_taps, row_block):
    """One (image, row-block) grid step of the conv-as-GEMM.

    x_ref : (Hp_pad, Wp*Cin)        padded image n, resident across row blocks
    wt_ref: (KH, Wp*Cin, Wo*Cout)   Toeplitz-expanded weights, resident
    b_ref : (1, Wo*Cout)            bias broadcast along the fused Wo*Cout lanes
    o_ref : (row_block, Wo*Cout)    lane-dense output tile
    """
    t = pl.program_id(1)
    row0 = pl.multiple_of(t * row_block, row_block)

    acc = jnp.zeros(o_ref.shape, jnp.float32)
    # Small static loop over the vertical taps; kw / ci / wo are all folded
    # into a single K = Wp*Cin contraction against the Toeplitz weight.
    for kh in range(kh_taps):
        a = x_ref[pl.ds(row0 + kh, row_block), :]            # (row_block, Wp*Cin)
        acc = acc + jnp.dot(a, wt_ref[kh],
                            preferred_element_type=jnp.float32)
    # Bias added once per output tile (not per tap / per grid-step broadcast).
    o_ref[...] = (acc + b_ref[...]).astype(o_ref.dtype)


def _round_up(x, m):
    return (x + m - 1) // m * m


def _pick_row_block(ho):
    # Largest multiple of 8 dividing Ho, capped so double-buffered tiles stay
    # far below v7x's 32 MiB default scoped VMEM.
    for cand in (128, 64, 32, 16, 8):
        if ho % cand == 0:
            return cand
    return ho


@functools.partial(jax.jit, static_argnames=("padding",))
def bfp_conv2d(x_nchw, w_oihw, bias, *, padding=1):
    """Forward of BFPConv2d: the wrapped Conv2d (stride=1, dilation=1, groups=1)."""
    N, Cin, H, W = x_nchw.shape
    Cout, Cin_w, KH, KW = w_oihw.shape
    assert Cin_w == Cin, "groups != 1 is not supported"
    Hp, Wp = H + 2 * padding, W + 2 * padding
    Ho, Wo = Hp - KH + 1, Wp - KW + 1

    th = _pick_row_block(Ho)
    assert Ho % th == 0 and th % 8 == 0, "Ho must be a multiple of 8 for this kernel"

    # ---- layout glue (one transpose+pad pass; reshapes are free views) ------
    Hp_pad = _round_up(Hp, 8)                  # sublane-aligned per-image block
    x_nhwc = jnp.transpose(x_nchw, (0, 2, 3, 1))
    x_pad = jnp.pad(
        x_nhwc,
        ((0, 0), (padding, padding + (Hp_pad - Hp)), (padding, padding), (0, 0)),
    )
    x2d = x_pad.reshape(N * Hp_pad, Wp * Cin)  # lane axis = fused W*Cin

    # ---- Toeplitz-expanded weights: fold kw, ci (and wo) into one GEMM ------
    # w_t[kh, wi*Cin+ci, wo*Cout+co] = w[co, ci, kh, wi-wo]  (0 if wi-wo not in [0,KW))
    w_hwio = jnp.transpose(w_oihw, (2, 3, 1, 0))             # (KH, KW, Cin, Cout)
    wi = jnp.arange(Wp)[:, None]
    wo = jnp.arange(Wo)[None, :]
    rel = wi - wo                                            # (Wp, Wo)
    valid = (rel >= 0) & (rel < KW)
    w_sel = w_hwio[:, jnp.clip(rel, 0, KW - 1)]              # (KH, Wp, Wo, Cin, Cout)
    w_sel = jnp.where(valid[None, :, :, None, None], w_sel, 0.0)
    w_t = jnp.transpose(w_sel, (0, 1, 3, 2, 4)).reshape(KH, Wp * Cin, Wo * Cout)

    b_lane = jnp.tile(bias, (Wo,)).reshape(1, Wo * Cout)     # b_lane[0, wo*Cout+co] = b[co]

    # ---- pallas call ---------------------------------------------------------
    grid = (N, Ho // th)
    kernel = functools.partial(_conv_gemm_kernel, kh_taps=KH, row_block=th)

    flops = 2 * N * Ho * KH * (Wp * Cin) * (Wo * Cout)
    bytes_accessed = 4 * (x2d.size + w_t.size + b_lane.size + N * Ho * Wo * Cout)

    out2d = pl.pallas_call(
        kernel,
        out_shape=jax.ShapeDtypeStruct((N * Ho, Wo * Cout), x_nchw.dtype),
        grid_spec=pltpu.PrefetchScalarGridSpec(
            num_scalar_prefetch=0,
            grid=grid,
            in_specs=[
                # one padded image; constant block index across the row-block
                # axis -> DMA'd once per image, stays resident
                pl.BlockSpec((Hp_pad, Wp * Cin), lambda n, t: (n, 0)),
                # tiny weights / bias stay resident in VMEM
                pl.BlockSpec((KH, Wp * Cin, Wo * Cout), lambda n, t: (0, 0, 0)),
                pl.BlockSpec((1, Wo * Cout), lambda n, t: (0, 0)),
            ],
            out_specs=pl.BlockSpec(
                (th, Wo * Cout), lambda n, t: (n * (Ho // th) + t, 0)
            ),
        ),
        compiler_params=pltpu.CompilerParams(
            dimension_semantics=("parallel", "arbitrary"),
            vmem_limit_bytes=32 * 1024 * 1024,
        ),
        cost_estimate=pl.CostEstimate(
            flops=flops, transcendentals=0, bytes_accessed=bytes_accessed
        ),
    )(x2d, w_t, b_lane)

    out = out2d.reshape(N, Ho, Wo, Cout)
    return jnp.transpose(out, (0, 3, 1, 2))                  # NHWC -> NCHW


if __name__ == "__main__":
    # BFPConv2d(m=nn.Conv2d(4, 8, kernel_size=3, stride=1, padding=1, bias=True),
    #           e_bit=8, m_bit=7) -- e_bit / m_bit are unused in forward().
    N, Cin, H, W = 2, 4, 16, 16
    Cout, KH, KW = 8, 3, 3
    padding = 1

    key = jax.random.PRNGKey(0)
    kx, kw_, kb = jax.random.split(key, 3)

    x = jax.random.normal(kx, (N, Cin, H, W), dtype=jnp.float32)
    fan_in = Cin * KH * KW
    bound = 1.0 / np.sqrt(fan_in)
    w = jax.random.uniform(kw_, (Cout, Cin, KH, KW), jnp.float32, -bound, bound)
    b = jax.random.uniform(kb, (Cout,), jnp.float32, -bound, bound)

    out = bfp_conv2d(x, w, b, padding=padding)
    out = jax.block_until_ready(out)

    # Sanity check against XLA's conv (same semantics as torch.nn.Conv2d).
    ref = jax.lax.conv_general_dilated(
        x, w, window_strides=(1, 1),
        padding=((padding, padding), (padding, padding)),
        dimension_numbers=("NCHW", "OIHW", "NCHW"),
    ) + b.reshape(1, Cout, 1, 1)
    np.testing.assert_allclose(np.asarray(out), np.asarray(ref), rtol=2e-4, atol=2e-4)

    print("KERNEL_OK")
</pallas_src>

<mosaic_0001>
module attributes {stable_mosaic.version = 11 : i64} {
  func.func @_conv_gemm_kernel(%arg0: i32, %arg1: i32, %arg2: memref<24x72xf32, #tpu.memory_space<vmem>>, %arg3: memref<3x72x128xf32, #tpu.memory_space<vmem>>, %arg4: memref<1x128xf32, #tpu.memory_space<vmem>>, %arg5: memref<16x128xf32, #tpu.memory_space<vmem>>) attributes {dimension_semantics = [#tpu.dimension_semantics<parallel>, #tpu.dimension_semantics<arbitrary>], iteration_bounds = array<i64: 2, 1>, scalar_prefetch = 0 : i64, scratch_operands = 0 : i64, tpu.core_type = #tpu.core_type<tc>, window_params = [{transform_indices = @transform_0, window_bounds = array<i64: 24, 72>}, {pipeline_mode = #tpu.pipeline_mode<synchronous>, transform_indices = @transform_1, window_bounds = array<i64: 3, 72, 128>}, {pipeline_mode = #tpu.pipeline_mode<synchronous>, transform_indices = @transform_2, window_bounds = array<i64: 1, 128>}, {transform_indices = @transform_3, window_bounds = array<i64: 16, 128>}]} {
    %c16_i32 = arith.constant 16 : i32
    %0 = arith.muli %arg1, %c16_i32 : i32
    %1 = tpu.assume_multiple %0, 16 : i32
    %cst = arith.constant 0.000000e+00 : f32
    %2 = vector.broadcast %cst : f32 to vector<16x128xf32>
    %c0_i32 = arith.constant 0 : i32
    %3 = arith.addi %1, %c0_i32 : i32
    %4 = arith.index_cast %3 : i32 to index
    %c0 = arith.constant 0 : index
    %5 = vector.load %arg2[%4, %c0] : memref<24x72xf32, #tpu.memory_space<vmem>>, vector<16x72xf32>
    %c0_0 = arith.constant 0 : index
    %c0_1 = arith.constant 0 : index
    %c0_2 = arith.constant 0 : index
    %6 = vector.load %arg3[%c0_0, %c0_1, %c0_2] : memref<3x72x128xf32, #tpu.memory_space<vmem>>, vector<1x72x128xf32>
    %7 = vector.shape_cast %6 : vector<1x72x128xf32> to vector<72x128xf32>
    %cst_3 = arith.constant dense<0.000000e+00> : vector<16x128xf32>
    %8 = tpu.matmul %5, %7, %cst_3 {dimension_numbers = #tpu.dot_dimension_numbers<[1], [0], [0], [1], [0, 0, 1, 1], [], []>} : vector<16x72xf32>, vector<72x128xf32>, vector<16x128xf32> -> vector<16x128xf32>
    %9 = arith.addf %2, %8 : vector<16x128xf32>
    %c1_i32 = arith.constant 1 : i32
    %10 = arith.addi %1, %c1_i32 : i32
    %11 = arith.index_cast %10 : i32 to index
    %c0_4 = arith.constant 0 : index
    %12 = vector.load %arg2[%11, %c0_4] : memref<24x72xf32, #tpu.memory_space<vmem>>, vector<16x72xf32>
    %c1 = arith.constant 1 : index
    %c0_5 = arith.constant 0 : index
    %c0_6 = arith.constant 0 : index
    %13 = vector.load %arg3[%c1, %c0_5, %c0_6] : memref<3x72x128xf32, #tpu.memory_space<vmem>>, vector<1x72x128xf32>
    %14 = vector.shape_cast %13 : vector<1x72x128xf32> to vector<72x128xf32>
    %cst_7 = arith.constant dense<0.000000e+00> : vector<16x128xf32>
    %15 = tpu.matmul %12, %14, %cst_7 {dimension_numbers = #tpu.dot_dimension_numbers<[1], [0], [0], [1], [0, 0, 1, 1], [], []>} : vector<16x72xf32>, vector<72x128xf32>, vector<16x128xf32> -> vector<16x128xf32>
    %16 = arith.addf %9, %15 : vector<16x128xf32>
    %c2_i32 = arith.constant 2 : i32
    %17 = arith.addi %1, %c2_i32 : i32
    %18 = arith.index_cast %17 : i32 to index
    %c0_8 = arith.constant 0 : index
    %19 = vector.load %arg2[%18, %c0_8] : memref<24x72xf32, #tpu.memory_space<vmem>>, vector<16x72xf32>
    %c2 = arith.constant 2 : index
    %c0_9 = arith.constant 0 : index
    %c0_10 = arith.constant 0 : index
    %20 = vector.load %arg3[%c2, %c0_9, %c0_10] : memref<3x72x128xf32, #tpu.memory_space<vmem>>, vector<1x72x128xf32>
    %21 = vector.shape_cast %20 : vector<1x72x128xf32> to vector<72x128xf32>
    %cst_11 = arith.constant dense<0.000000e+00> : vector<16x128xf32>
    %22 = tpu.matmul %19, %21, %cst_11 {dimension_numbers = #tpu.dot_dimension_numbers<[1], [0], [0], [1], [0, 0, 1, 1], [], []>} : vector<16x72xf32>, vector<72x128xf32>, vector<16x128xf32> -> vector<16x128xf32>
    %23 = arith.addf %16, %22 : vector<16x128xf32>
    %c0_12 = arith.constant 0 : index
    %c0_13 = arith.constant 0 : index
    %24 = vector.load %arg4[%c0_12, %c0_13] : memref<1x128xf32, #tpu.memory_space<vmem>>, vector<1x128xf32>
    %25 = vector.broadcast %24 : vector<1x128xf32> to vector<16x128xf32>
    %26 = arith.addf %23, %25 : vector<16x128xf32>
    %c0_14 = arith.constant 0 : index
    %c0_15 = arith.constant 0 : index
    %27 = vector.load %arg5[%c0_14, %c0_15] : memref<16x128xf32, #tpu.memory_space<vmem>>, vector<16x128xf32>
    tpu.vector_store %arg5[%c0_14, %c0_15], %26 {strides = array<i32>} : memref<16x128xf32, #tpu.memory_space<vmem>>, vector<16x128xf32>,
    return
  }
  func.func @transform_0(%arg0: i32, %arg1: i32) -> (i32, i32) {
    %c0_i32 = arith.constant 0 : i32
    %c0_i32_0 = arith.constant 0 : i32
    return %arg0, %c0_i32 : i32, i32
  }
  func.func @transform_1(%arg0: i32, %arg1: i32) -> (i32, i32, i32) {
    %c0_i32 = arith.constant 0 : i32
    %c0_i32_0 = arith.constant 0 : i32
    %c0_i32_1 = arith.constant 0 : i32
    %c0_i32_2 = arith.constant 0 : i32
    return %c0_i32, %c0_i32_0, %c0_i32_1 : i32, i32, i32
  }
  func.func @transform_2(%arg0: i32, %arg1: i32) -> (i32, i32) {
    %c0_i32 = arith.constant 0 : i32
    %c0_i32_0 = arith.constant 0 : i32
    %c0_i32_1 = arith.constant 0 : i32
    return %c0_i32, %c0_i32_0 : i32, i32
  }
  func.func @transform_3(%arg0: i32, %arg1: i32) -> (i32, i32) {
    %c1_i32 = arith.constant 1 : i32
    %0 = arith.muli %arg0, %c1_i32 : i32
    %1 = arith.addi %0, %arg1 : i32
    %c0_i32 = arith.constant 0 : i32
    %c0_i32_0 = arith.constant 0 : i32
    return %1, %c0_i32 : i32, i32
  }
}

</mosaic_0001>

<bundles_post_ra>
// kernel: tile.8
= control target key start
LH: loop header
LB: loop body
LE: loop exit
PB: predicated region body
PF: predicated region fallthrough
CT: control target
= control target key end

     0   :  { %s28_s0 = inlined_call_operand.vmem [shape: f32[8], index: 0, kind: input, shape index: {}]   ;;  %s29_s1 = inlined_call_operand.vmem [shape: f32[16,8], index: 1, kind: output, shape index: {}]  }
   0x1   :  { %v4_v0 = vld [vmem:[%s28_s0] ss:$0 sm:$0xff] }
   0x2   :  { %5 = vst [vmem:[%s29_s1] sm:$0xff] %v4_v0  ;;  %8 = vst [vmem:[%s29_s1 + $0x8] sm:$0xff] %v4_v0 }

// kernel: tile.9
= control target key start
LH: loop header
LB: loop body
LE: loop exit
PB: predicated region body
PF: predicated region fallthrough
CT: control target
= control target key end

     0   :  { %s131_s10 = smov 120   ;;  %s132_s11 = smov 104   ;;  %vm3_vm0 = vcmask 64512   ;;  %vm9_vm1 = vcmask 1048512   ;;  %vm15_vm2 = vcmask 982912   ;;  %vm21_vm3 = vcmask 917312   ;;  %s207_s0 = inlined_call_operand.vmem [shape: f32[16,8], index: 0, kind: input, shape index: {}]   ;;  %s208_s1 = inlined_call_operand.vmem [shape: f32[1,128], index: 1, kind: output, shape index: {}]  }
   0x1   :  { %v101_v0 = vld [vmem:[%s207_s0 + $0xf] sm:$0x1]   ;;  %v103_v1 = vld [vmem:[%s207_s0 + $0xd] sm:$0x1]   ;;  %v102_v2 = vld [vmem:[%s207_s0 + $0xe] sm:$0x1]  }
   0x2   :  { %7 = vrot.lane.b32.xlu0 %v101_v0, %s131_s10  ;;  %19 = vrot.lane.b32.xlu1 %v103_v1, %s132_s11  ;;  %v104_v3 = vld [vmem:[%s207_s0 + $0xc] sm:$0x1]   ;;  %s133_s16 = smov 112   ;;  %s134_s17 = smov 96   ;;  %v105_v4 = vld [vmem:[%s207_s0 + $0xb] sm:$0x1]  }
   0x3   :  { %v106_v5 = vld [vmem:[%s207_s0 + $0xa] sm:$0x1]   ;;  %v2_v6 = vld [vmem:[%s207_s0] sm:$0x1]   ;;  %s135_s24 = smov 88   ;;  %s136_s25 = smov 80  }
   0x4   :  { %4 = vst.msk [vmem:[#allocation0] sm:$0x1] %vm3_vm0, %v2_v6   ;;  %v107_v7 = vld [vmem:[%s207_s0 + $0x9] sm:$0x1]   ;;  %v108_v8 = vld [vmem:[%s207_s0 + $0x8] sm:$0x1]  }
   0x5   :  { %s137_s30 = smov 72   ;;  %s138_s2 = smov 64   ;;  %v109_v9 = vld [vmem:[%s207_s0 + $0x7] sm:$0x1]   ;;  %v110_v10 = vld [vmem:[%s207_s0 + $0x6] sm:$0x1]  }
   0x6   :  { %13 = vrot.lane.b32.xlu0 %v102_v2, %s133_s16  ;;  %25 = vrot.lane.b32.xlu1 %v104_v3, %s134_s17  ;;  %s139_s7 = smov 56   ;;  %s140_s8 = smov 48   ;;  %v111_v11 = vld [vmem:[%s207_s0 + $0x5] sm:$0x1]   ;;  %v112_v12 = vld [vmem:[%s207_s0 + $0x4] sm:$0x1]  }
   0x7   :  { %s141_s13 = smov 40   ;;  %s142_s14 = smov 32   ;;  %v113_v13 = vld [vmem:[%s207_s0 + $0x3] sm:$0x1]   ;;  %v114_v14 = vld [vmem:[%s207_s0 + $0x2] sm:$0x1]  }
   0x8   :  { %s143_s19 = smov 24   ;;  %s144_s20 = smov 16   ;;  %v115_v15 = vld [vmem:[%s207_s0 + $0x1] sm:$0x1]   ;;  %vm27_vm4 = vcmask 851712   ;;  %vm33_vm5 = vcmask 786112  }
   0x9   :  { %s145_s0 = smov 8   ;;  %vm39_vm6 = vcmask 720512   ;;  %vm45_vm7 = vcmask 654912   ;;  %vm51_vm8 = vcmask 589312   ;;  %vm57_vm9 = vcmask 523712  }
   0xa   :  { %31 = vrot.lane.b32.xlu0 %v105_v4, %s135_s24  ;;  %37 = vrot.lane.b32.xlu1 %v106_v5, %s136_s25  ;;  %vm63_vm10 = vcmask 458112   ;;  %vm69_vm11 = vcmask 392512   ;;  %vm75_vm12 = vcmask 326912   ;;  %vm81_vm13 = vcmask 261312  }
   0xb   :  { %vm87_vm14 = vcmask 195712   ;;  %vm93_vm15 = vcmask 130112  }
   0xe   :  { %43 = vrot.lane.b32.xlu0 %v107_v7, %s137_s30  ;;  %49 = vrot.lane.b32.xlu1 %v108_v8, %s138_s2 }
  0x12   :  { %55 = vrot.lane.b32.xlu0 %v109_v9, %s139_s7  ;;  %61 = vrot.lane.b32.xlu1 %v110_v10, %s140_s8 }
  0x16   :  { %67 = vrot.lane.b32.xlu0 %v111_v11, %s141_s13  ;;  %73 = vrot.lane.b32.xlu1 %v112_v12, %s142_s14 }
  0x1a   :  { %79 = vrot.lane.b32.xlu0 %v113_v13, %s143_s19  ;;  %85 = vrot.lane.b32.xlu1 %v114_v14, %s144_s20 }
  0x1e   :  { %91 = vrot.lane.b32.xlu0 %v115_v15, %s145_s0 }
  0x74   :  { %v8_v16 = vpop.permute.xlu0 %7   ;;  %v20_v17 = vpop.permute.xlu1 %19  }
  0x75   :  { %10 = vst.msk [vmem:[#allocation0] sm:$0x1] %vm9_vm1, %v8_v16  }
  0x78   :  { %v14_v18 = vpop.permute.xlu0 %13   ;;  %v26_v19 = vpop.permute.xlu1 %25  }
  0x79   :  { %16 = vst.msk [vmem:[#allocation0] sm:$0x1] %vm15_vm2, %v14_v18  }
  0x7a   :  { %22 = vst.msk [vmem:[#allocation0] sm:$0x1] %vm21_vm3, %v20_v17  }
  0x7b   :  { %28 = vst.msk [vmem:[#allocation0] sm:$0x1] %vm27_vm4, %v26_v19  }
  0x7c   :  { %v32_v20 = vpop.permute.xlu0 %31   ;;  %v38_v21 = vpop.permute.xlu1 %37  }
  0x7d   :  { %34 = vst.msk [vmem:[#allocation0] sm:$0x1] %vm33_vm5, %v32_v20  }
  0x7e   :  { %40 = vst.msk [vmem:[#allocation0] sm:$0x1] %vm39_vm6, %v38_v21  }
  0x80   :  { %v44_v22 = vpop.permute.xlu0 %43   ;;  %v50_v23 = vpop.permute.xlu1 %49  }
  0x81   :  { %46 = vst.msk [vmem:[#allocation0] sm:$0x1] %vm45_vm7, %v44_v22  }
  0x82   :  { %52 = vst.msk [vmem:[#allocation0] sm:$0x1] %vm51_vm8, %v50_v23  }
  0x84   :  { %v56_v24 = vpop.permute.xlu0 %55   ;;  %v62_v25 = vpop.permute.xlu1 %61  }
  0x85   :  { %58 = vst.msk [vmem:[#allocation0] sm:$0x1] %vm57_vm9, %v56_v24  }
  0x86   :  { %64 = vst.msk [vmem:[#allocation0] sm:$0x1] %vm63_vm10, %v62_v25  }
  0x88   :  { %v68_v26 = vpop.permute.xlu0 %67   ;;  %v74_v27 = vpop.permute.xlu1 %73  }
  0x89   :  { %70 = vst.msk [vmem:[#allocation0] sm:$0x1] %vm69_vm11, %v68_v26  }
  0x8a   :  { %76 = vst.msk [vmem:[#allocation0] sm:$0x1] %vm75_vm12, %v74_v27  }
  0x8c   :  { %v80_v28 = vpop.permute.xlu0 %79   ;;  %v86_v29 = vpop.permute.xlu1 %85  }
  0x8d   :  { %82 = vst.msk [vmem:[#allocation0] sm:$0x1] %vm81_vm13, %v80_v28  }
  0x8e   :  { %88 = vst.msk [vmem:[#allocation0] sm:$0x1] %vm87_vm14, %v86_v29  }
  0x90   :  { %v92_v30 = vpop.permute.xlu0 %91  }
  0x91   :  { %94 = vst.msk [vmem:[#allocation0] sm:$0x1] %vm93_vm15, %v92_v30  }
  0x98   :  { %v98_v31 = vld [vmem:[#allocation0] sm:$0x1] }
  0x99   :  { %100 = vst [vmem:[%s208_s1] sm:$0x1] %v98_v31 }

// kernel: bfp_conv2d.1
= control target key start
LH: loop header
LB: loop body
LE: loop exit
PB: predicated region body
PF: predicated region fallthrough
CT: control target
= control target key end

     0   :  { %s820_s12 = smov 0   ;;  %s822_s13 = smov 0   ;;  %s955_s0 = inlined_call_operand.vmem [shape: f32[48,72], index: 0, kind: input, shape index: {}]   ;;  %s956_s1 = inlined_call_operand.vmem [shape: f32[3,72,128], index: 1, kind: input, shape index: {}]   ;;  %s957_s2 = inlined_call_operand.vmem [shape: f32[1,128], index: 2, kind: input, shape index: {}]   ;;  %s958_s3 = inlined_call_operand.vmem [shape: f32[32,128], index: 3, kind: output, shape index: {}]  }
   0x1   :  { %s824_s14 = smov 0  }
   0x2 LB: > { %s25_s15 = sadd.s32 1, %s794_s13  ;;  %p569_p0 = scmp.ge.s32.totalorder %s798_s14, 1  ;;  %s798_s14 = sphi %s824_s14, %s13_s14   ;;  %s794_s13 = sphi %s822_s13, %s960_s13   ;;  %s790_s12 = sphi %s820_s12, %s959_s12  }
   0x3   : > { %p27_p1 = scmp.ge.s32.totalorder %s25_s15, 2  ;;  %p152_p2 = scmp.lt.s32.totalorder %s798_s14, 3 }
   0x5   : > { %s962_s15 = smov (%p27_p1, %s25_s15), 0  ;;  %p153_p3 = pnand %p569_p0, %p152_p2 }
   0x6   : > { %v195_v0 = vld [vmem:[%s956_s1] sm:$0xff] (!%p153_p3)  ;;  %v196_v1 = vld [vmem:[%s956_s1 + $0x8] sm:$0xff] (!%p153_p3)  ;;  %v197_v2 = vld [vmem:[%s956_s1 + $0x10] sm:$0xff] (!%p153_p3)  ;;  %s177_s22 = smul.u32 (!%p153_p3), 3, %s790_s12  ;;  %vm218_vm0 = vcmask (!%p153_p3), 588800   ;;  %s571_s30 = sshll.u32 (!%p153_p3), %s790_s12, 1 }
   0x7   : > { %156 = sbr.rel (%p153_p3) target bundleno = 263 (0x107), region = 32  ;;  %v716_v3 = vpack.c.bf16 (!%p153_p3), %v196_v1, %v195_v0  ;;  %v198_v4 = vld [vmem:[%s956_s1 + $0x18] sm:$0xff] (!%p153_p3)  ;;  %v199_v6 = vld [vmem:[%s956_s1 + $0x20] sm:$0xff] (!%p153_p3)  ;;  %v200_v7 = vld [vmem:[%s956_s1 + $0x28] sm:$0xff] (!%p153_p3)  ;;  %p185_p5 = scmp.lt.s32.totalorder (!%p153_p3), %s571_s30, 3 }
   0x8   : > { %v720_v5 = vpack.c.bf16 (!%p153_p3), %v198_v4, %v197_v2  ;;  %p178_p4 = scmp.lt.s32.totalorder (!%p153_p3), %s177_s22, 5  ;;  %v575_v8 = vld [vmem:[%s956_s1 + $0x48] sm:$0xff] (!%p153_p3)  ;;  %v576_v9 = vld [vmem:[%s956_s1 + $0x50] sm:$0xff] (!%p153_p3)  ;;  %v577_v11 = vld [vmem:[%s956_s1 + $0x58] sm:$0xff] (!%p153_p3)  ;;  %v724_v13 = vpack.c.bf16 (!%p153_p3), %v200_v7, %v199_v6 }
   0x9   : > { %717 = vmatprep.subr.bf16.mxu0 (!%p153_p3), %v716_v3  ;;  %v700_v10 = vpack.c.bf16 (!%p153_p3), %v576_v9, %v575_v8  ;;  %v578_v12 = vld [vmem:[%s956_s1 + $0x60] sm:$0xff] (!%p153_p3)  ;;  %v579_v15 = vld [vmem:[%s956_s1 + $0x68] sm:$0xff] (!%p153_p3)  ;;  %v201_v16 = vld [vmem:[%s956_s1 + $0x30] sm:$0xff] (!%p153_p3) }
   0xa   : > { %719 = vmatpush3.bf16.msra.mxu0 (!%p153_p3), %v716_v3  ;;  %v704_v14 = vpack.c.bf16 (!%p153_p3), %v578_v12, %v577_v11  ;;  %v202_v17 = vld [vmem:[%s956_s1 + $0x38] sm:$0xff] (!%p153_p3)  ;;  %v580_v18 = vld [vmem:[%s956_s1 + $0x70] sm:$0xff] (!%p153_p3)  ;;  %v582_v23 = vld [vmem:[%s956_s1 + $0x80] sm:$0xff] (!%p153_p3) }
   0xb   : > { %721 = vmatprep.subr.bf16.mxu0 (!%p153_p3), %v720_v5  ;;  %701 = vmatprep.subr.bf16.mxu1 (!%p153_p3), %v700_v10  ;;  %v708_v20 = vpack.c.bf16 (!%p153_p3), %v580_v18, %v579_v15  ;;  %v728_v21 = vpack.c.bf16 (!%p153_p3), %v202_v17, %v201_v16  ;;  %v581_v22 = vld [vmem:[%s956_s1 + $0x78] sm:$0xff] (!%p153_p3)  ;;  %v203_v26 = vld [vmem:[%s956_s1 + $0x40] sm:$0xff] (!%p153_p3)  ;;  %v590_v27 = vld [vmem:[%s956_s1 + $0x90] sm:$0xff] (!%p153_p3) }
   0xc   : > { %703 = vmatpush3.bf16.msra.mxu1 (!%p153_p3), %v700_v10  ;;  %v712_v25 = vpack.c.bf16 (!%p153_p3), %v582_v23, %v581_v22  ;;  %v591_v28 = vld [vmem:[%s956_s1 + $0x98] sm:$0xff] (!%p153_p3)  ;;  %v592_v29 = vld [vmem:[%s956_s1 + $0xa0] sm:$0xff] (!%p153_p3)  ;;  %v593_v30 = vld [vmem:[%s956_s1 + $0xa8] sm:$0xff] (!%p153_p3) }
   0xd   : > { %705 = vmatprep.subr.bf16.mxu1 (!%p153_p3), %v704_v14  ;;  %v732_v31 = vpack.c.bf16 (!%p153_p3), %v591_v28, %v590_v27  ;;  %v583_v32 = vld [vmem:[%s956_s1 + $0x88] sm:$0xff] (!%p153_p3)  ;;  %v736_v34 = vpack.c.bf16 (!%p153_p3), %v593_v30, %v592_v29  ;;  %v594_v36 = vld [vmem:[%s956_s1 + $0xb0] sm:$0xff] (!%p153_p3)  ;;  %v595_v37 = vld [vmem:[%s956_s1 + $0xb8] sm:$0xff] (!%p153_p3) }
   0xe   : > { %s964_s22 = smov (!%p178_p4, %s177_s22), 5  ;;  %723 = vmatpush3.bf16.msra.mxu0 %v720_v5  ;;  %v740_v39 = vpack.c.bf16 %v595_v37, %v594_v36  ;;  %v596_v40 = vld [vmem:[%s956_s1 + $0xc0] sm:$0xff]  ;;  %v597_v41 = vld [vmem:[%s956_s1 + $0xc8] sm:$0xff]  ;;  %v598_v43 = vld [vmem:[%s956_s1 + $0xd0] sm:$0xff]  ;;  %s966_s30 = smov (!%p185_p5, %s571_s30), 3 }
   0xf   : > { %s570_s20 = sshll.u32 %s964_s22, 3  ;;  %725 = vmatprep.subr.bf16.mxu0 %v724_v13  ;;  %v744_v42 = vpack.c.bf16 %v597_v41, %v596_v40  ;;  %s572_s4 = sshll.u32 %s966_s30, 3  ;;  %v601_v49 = vld [vmem:[%s957_s2] ss:$0 sm:$0xff] }
  0x10   : > { %s886_s26 = scalar_lea.vmem %s955_s0, %s570_s20  ;;  %707 = vmatpush3.bf16.msra.mxu1 %v704_v14 }
  0x11   : > { %v193_v19 = vld [vmem:[%s886_s26] sm:$0xff]  ;;  %709 = vmatprep.subr.bf16.mxu1 %v708_v20  ;;  %v194_v33 = vld [vmem:[%s886_s26 + $0x8] sm:$0xff] }
  0x12   : > { %676 = vmatprep.mubr.msk.f32.mxu0 %vm218_vm0, %v193_v19  ;;  %v573_v24 = vld [vmem:[%s886_s26 + $0x1] sm:$0xff]  ;;  %727 = vmatpush3.bf16.msra.mxu0 %v724_v13  ;;  %v574_v38 = vld [vmem:[%s886_s26 + $0x9] sm:$0xff] }
  0x13   : > { %655 = vmatprep.mubr.msk.f32.mxu1 %vm218_vm0, %v573_v24  ;;  %729 = vmatprep.subr.bf16.mxu0 %v728_v21  ;;  %v588_v35 = vld [vmem:[%s886_s26 + $0x2] sm:$0xff]  ;;  %v589_v44 = vld [vmem:[%s886_s26 + $0xa] sm:$0xff]  ;;  %s188_s26 = scalar_lea.vmem %s958_s3, %s572_s4 }
  0x14   : > { %711 = vmatpush3.bf16.msra.mxu1 %v708_v20 }
  0x15   : > { %713 = vmatprep.subr.bf16.mxu1 %v712_v25 }
  0x16   : > { %731 = vmatpush3.bf16.msra.mxu0 %v728_v21 }
  0x17   : > { %674 = vmatprep.subr.mxu0 %v203_v26 }
  0x18   : > { %715 = vmatpush3.bf16.msra.mxu1 %v712_v25 }
  0x19   : > { %653 = vmatprep.subr.mxu1 %v583_v32 }
  0x1a   : > { %675 = vmatpush3.msra.mxu0 %v203_v26 }
  0x1b   : > { %733 = vmatprep.subr.bf16.mxu0 %v732_v31  ;;  %677 = vmatmul.mubr.msk.f32.vlgmr.msra.gmra.mrb[0].mxu0 %vm218_vm0, %v194_v33 }
  0x1c   : > { %735 = vmatpush3.bf16.msra.mxu0 %v732_v31  ;;  %697 = vmatprep.mubr.msk.f32.mxu0 %vm218_vm0, %v588_v35 }
  0x1d   : > { %737 = vmatprep.subr.bf16.mxu0 %v736_v34  ;;  %654 = vmatpush3.msra.mxu1 %v583_v32 }
  0x1e   : > { %656 = vmatmul.mubr.msk.f32.vlgmr.msra.gmra.mrb[0].mxu1 %vm218_vm0, %v574_v38 }
  0x20   : > { %739 = vmatpush3.bf16.msra.mxu0 %v736_v34 }
  0x21   : > { %741 = vmatprep.subr.bf16.mxu0 %v740_v39 }
  0x24   : > { %743 = vmatpush3.bf16.msra.mxu0 %v740_v39 }
  0x25   : > { %745 = vmatprep.subr.bf16.mxu0 %v744_v42 }
  0x28   : > { %747 = vmatpush3.bf16.msra.mxu0 %v744_v42 }
  0x29   : > { %695 = vmatprep.subr.mxu0 %v598_v43 }
  0x2c   : > { %696 = vmatpush3.msra.mxu0 %v598_v43 }
  0x2d   : > { %698 = vmatmul.mubr.msk.f32.vlgmr.msra.gmra.mrb[0].mxu0 %vm218_vm0, %v589_v44 }
  0xf1   : > { %v657_v45 = vpop.f32.mrb[0].mxu1 }
  0xf2   : > { %v291_v46 = vpop.f32.mrb[1].mxu1 }
 0x100   : > { %v699_v47 = vpop.f32.mrb[0].mxu0 }
 0x101   : > { %v748_v48 = vadd.f32 %v699_v47, %v657_v45  ;;  %v467_v50 = vpop.f32.mrb[1].mxu0 }
 0x102   : > { %v749_v51 = vadd.f32 %v467_v50, %v291_v46 }
 0x103   : > { %v486_v53 = vadd.f32 %v748_v48, %v601_v49 }
 0x104   : > { %v485_v52 = vadd.f32 %v749_v51, %v601_v49 }
 0x105   : > { %488 = vst [vmem:[%s188_s26 + $0x8] sm:$0xff] %v486_v53 }
 0x106   : > { %487 = vst [vmem:[%s188_s26] sm:$0xff] %v485_v52 }
 0x107 PF: > { %s13_s14 = sadd.s32 1, %s798_s14   ;;  %s959_s12 = smov %s794_s13 }
 0x108   : > { %p10_p6 = scmp.ge.s32.totalorder %s13_s14, 4   ;;  %s960_s13 = smov %s962_s15 }
 0x10a   :  { %12 = sbr.rel (!%p10_p6) target bundleno = 2 (0x2), region = 67 }

</bundles_post_ra>
